<compile_context>
chip_gen: v7x
topology: tpu7x:2x2x1
jax: 0.10.0
libtpu: 0.0.40
codegen_flags: <defaults>
</compile_context>

<pallas_src>
import jax
import jax.numpy as jnp
from jax.experimental import pallas as pl
from jax.experimental.pallas import tpu as pltpu


def _w2v_kernel(in_ids, pos_ids, neg_ids,      # SMEM scalar-prefetch refs
                in_tbl, out_tbl,               # HBM (ANY) refs: (V, E)
                loss_ref,                      # VMEM output (1, 1)
                rows_scr,                      # VMEM scratch (C+N+1, E)
                sem):                          # single shared DMA semaphore
    C = pos_ids.shape[0]
    N = neg_ids.shape[0]

    # ---- row gather: HBM table rows -> one dense VMEM scratch ---------------
    # Layout: rows [0, C) = positive ctx, [C, C+N) = negative ctx,
    # row C+N = center word.  All copies share one DMA semaphore; all scalar
    # id reads happen before the first wait (keeps sst->sld forwarding alive).
    copies = []
    for c in range(C):
        copies.append(pltpu.make_async_copy(
            out_tbl.at[pl.ds(pos_ids[c], 1), :],
            rows_scr.at[pl.ds(c, 1), :], sem))
    for n in range(N):
        copies.append(pltpu.make_async_copy(
            out_tbl.at[pl.ds(neg_ids[n], 1), :],
            rows_scr.at[pl.ds(C + n, 1), :], sem))
    copies.append(pltpu.make_async_copy(
        in_tbl.at[pl.ds(in_ids[0], 1), :],
        rows_scr.at[pl.ds(C + N, 1), :], sem))
    for cp in copies:
        cp.start()
    for cp in copies:   # each wait retires its own byte count on the shared sem
        cp.wait()

    # ---- fused dot products (VPU multiply + XLU lane-reduce) ----------------
    in_row = rows_scr[pl.ds(C + N, 1), :]                    # (1, E)
    ctx = rows_scr[pl.ds(0, C + N), :]                       # (C+N, E)
    dots = jnp.sum(ctx * in_row, axis=-1, keepdims=True)     # (C+N, 1)

    # bmm(pos, in) uses +in, bmm(neg, -in) uses -in: C and N are Python ints,
    # so these are free static slices and only the N-tail dots get negated.
    # NOTE: torch.sigmoid (not logsigmoid), faithful to the reference module.
    log_pos = jnp.sum(jax.nn.sigmoid(dots[:C]), keepdims=True)    # (1, 1)
    log_neg = jnp.sum(jax.nn.sigmoid(-dots[C:]), keepdims=True)   # (1, 1)
    loss_ref[...] = -(log_pos + log_neg)


def word2vec_loss(in_w, out_w, input_labels, pos_labels, neg_labels):
    V, E = in_w.shape
    C = pos_labels.shape[0]
    N = neg_labels.shape[0]
    R = C + N + 1

    # TODO(synk): the reference's unsqueeze/bmm pattern fixes batch == 1, so
    # grid=(1,).  If the interface ever allows B > 1 center words, add a
    # leading "parallel" grid axis over centers (shards across v7x's two
    # TensorCores), double-buffer the row gathers across steps, and emit a
    # lane-dense (1, B) loss row instead of a (1, 1) masked store -- that is
    # the dominant throughput lever for this kernel.
    out = pl.pallas_call(
        _w2v_kernel,
        out_shape=jax.ShapeDtypeStruct((1, 1), jnp.float32),
        grid_spec=pltpu.PrefetchScalarGridSpec(
            num_scalar_prefetch=3,
            grid=(1,),
            in_specs=[
                pl.BlockSpec(memory_space=pl.ANY),   # in_embed table (HBM)
                pl.BlockSpec(memory_space=pl.ANY),   # out_embed table (HBM)
            ],
            out_specs=pl.BlockSpec((1, 1), lambda i, *_: (0, 0)),
            scratch_shapes=[
                pltpu.VMEM((R, E), jnp.float32),     # dense (R, E) row gather
                pltpu.SemaphoreType.DMA,             # one shared DMA semaphore
            ],
        ),
        compiler_params=pltpu.CompilerParams(
            dimension_semantics=("arbitrary",)),
    )(input_labels, pos_labels, neg_labels, in_w, out_w)
    # torch: (-log_pos - log_neg).squeeze() -> scalar
    return out.reshape(())


def reference_loss(in_w, out_w, input_labels, pos_labels, neg_labels):
    # Pure-JAX mirror of the PyTorch forward (batch = 1).
    iv = in_w[input_labels[0]]                # [E]
    pe = out_w[pos_labels]                    # [C, E]
    ne = out_w[neg_labels]                    # [N, E]
    log_pos = jnp.sum(jax.nn.sigmoid(pe @ iv))
    log_neg = jnp.sum(jax.nn.sigmoid(-(ne @ iv)))
    return -log_pos - log_neg


if __name__ == "__main__":
    VOC_SIZE = 64
    EMB_SIZE = 32    # NOTE: realistic word2vec dims (>=128) would be lane-dense
    C = 4            # number of positive context labels
    N = 8            # number of negative samples

    key = jax.random.PRNGKey(0)
    k_in, k_out, k_i, k_p, k_n = jax.random.split(key, 5)

    init_range = 0.5 / EMB_SIZE
    in_w = jax.random.uniform(k_in, (VOC_SIZE, EMB_SIZE), jnp.float32,
                              -init_range, init_range)
    out_w = jax.random.uniform(k_out, (VOC_SIZE, EMB_SIZE), jnp.float32,
                               -init_range, init_range)

    input_labels = jax.random.randint(k_i, (1,), 0, VOC_SIZE, jnp.int32)
    pos_labels = jax.random.randint(k_p, (C,), 0, VOC_SIZE, jnp.int32)
    neg_labels = jax.random.randint(k_n, (N,), 0, VOC_SIZE, jnp.int32)

    loss = word2vec_loss(in_w, out_w, input_labels, pos_labels, neg_labels)
    jax.block_until_ready(loss)

    expected = reference_loss(in_w, out_w, input_labels, pos_labels, neg_labels)
    assert loss.shape == (), f"expected scalar loss, got shape {loss.shape}"
    assert jnp.allclose(loss, expected, rtol=1e-5, atol=1e-5), (loss, expected)

    print("KERNEL_OK")
</pallas_src>

<mosaic_0001>
module attributes {stable_mosaic.version = 11 : i64} {
  func.func @_w2v_kernel(%arg0: i32, %arg1: memref<1xi32, #tpu.memory_space<smem>>, %arg2: memref<4xi32, #tpu.memory_space<smem>>, %arg3: memref<8xi32, #tpu.memory_space<smem>>, %arg4: memref<64x32xf32, #tpu.memory_space<any>>, %arg5: memref<64x32xf32, #tpu.memory_space<any>>, %arg6: memref<1x1xf32, #tpu.memory_space<vmem>>, %arg7: memref<13x32xf32, #tpu.memory_space<vmem>>, %arg8: memref<!tpu.dma_semaphore, #tpu.memory_space<semaphore_mem>>) attributes {dimension_semantics = [#tpu.dimension_semantics<arbitrary>], iteration_bounds = array<i64: 1>, scalar_prefetch = 3 : i64, scratch_operands = 2 : i64, tpu.core_type = #tpu.core_type<tc>, window_params = [{}, {}, {pipeline_mode = #tpu.pipeline_mode<synchronous>, transform_indices = @transform_2, window_bounds = array<i64: 1, 1>}]} {
    %c0 = arith.constant 0 : index
    %0 = memref.load %arg2[%c0] : memref<4xi32, #tpu.memory_space<smem>>
    %c1 = arith.constant 1 : index
    %1 = memref.load %arg2[%c1] : memref<4xi32, #tpu.memory_space<smem>>
    %c2 = arith.constant 2 : index
    %2 = memref.load %arg2[%c2] : memref<4xi32, #tpu.memory_space<smem>>
    %c3 = arith.constant 3 : index
    %3 = memref.load %arg2[%c3] : memref<4xi32, #tpu.memory_space<smem>>
    %c0_0 = arith.constant 0 : index
    %4 = memref.load %arg3[%c0_0] : memref<8xi32, #tpu.memory_space<smem>>
    %c1_1 = arith.constant 1 : index
    %5 = memref.load %arg3[%c1_1] : memref<8xi32, #tpu.memory_space<smem>>
    %c2_2 = arith.constant 2 : index
    %6 = memref.load %arg3[%c2_2] : memref<8xi32, #tpu.memory_space<smem>>
    %c3_3 = arith.constant 3 : index
    %7 = memref.load %arg3[%c3_3] : memref<8xi32, #tpu.memory_space<smem>>
    %c4 = arith.constant 4 : index
    %8 = memref.load %arg3[%c4] : memref<8xi32, #tpu.memory_space<smem>>
    %c5 = arith.constant 5 : index
    %9 = memref.load %arg3[%c5] : memref<8xi32, #tpu.memory_space<smem>>
    %c6 = arith.constant 6 : index
    %10 = memref.load %arg3[%c6] : memref<8xi32, #tpu.memory_space<smem>>
    %c7 = arith.constant 7 : index
    %11 = memref.load %arg3[%c7] : memref<8xi32, #tpu.memory_space<smem>>
    %c0_4 = arith.constant 0 : index
    %12 = memref.load %arg1[%c0_4] : memref<1xi32, #tpu.memory_space<smem>>
    %c0_i32 = arith.constant 0 : i32
    %13 = tpu.memref_slice %arg5[%0, %c0_i32] : memref<64x32xf32, #tpu.memory_space<any>> -> memref<1x32xf32, #tpu.memory_space<any>>
    %c0_i32_5 = arith.constant 0 : i32
    %c0_i32_6 = arith.constant 0 : i32
    %14 = tpu.memref_slice %arg7[%c0_i32_5, %c0_i32_6] : memref<13x32xf32, #tpu.memory_space<vmem>> -> memref<1x32xf32, #tpu.memory_space<vmem>>
    tpu.enqueue_dma source(%13 : memref<1x32xf32, #tpu.memory_space<any>>) target(%14 : memref<1x32xf32, #tpu.memory_space<vmem>>) target_semaphore(%arg8 : memref<!tpu.dma_semaphore, #tpu.memory_space<semaphore_mem>>)
    %c0_i32_7 = arith.constant 0 : i32
    %15 = tpu.memref_slice %arg5[%1, %c0_i32_7] : memref<64x32xf32, #tpu.memory_space<any>> -> memref<1x32xf32, #tpu.memory_space<any>>
    %c1_i32 = arith.constant 1 : i32
    %c0_i32_8 = arith.constant 0 : i32
    %16 = tpu.memref_slice %arg7[%c1_i32, %c0_i32_8] : memref<13x32xf32, #tpu.memory_space<vmem>> -> memref<1x32xf32, #tpu.memory_space<vmem>>
    tpu.enqueue_dma source(%15 : memref<1x32xf32, #tpu.memory_space<any>>) target(%16 : memref<1x32xf32, #tpu.memory_space<vmem>>) target_semaphore(%arg8 : memref<!tpu.dma_semaphore, #tpu.memory_space<semaphore_mem>>)
    %c0_i32_9 = arith.constant 0 : i32
    %17 = tpu.memref_slice %arg5[%2, %c0_i32_9] : memref<64x32xf32, #tpu.memory_space<any>> -> memref<1x32xf32, #tpu.memory_space<any>>
    %c2_i32 = arith.constant 2 : i32
    %c0_i32_10 = arith.constant 0 : i32
    %18 = tpu.memref_slice %arg7[%c2_i32, %c0_i32_10] : memref<13x32xf32, #tpu.memory_space<vmem>> -> memref<1x32xf32, #tpu.memory_space<vmem>>
    tpu.enqueue_dma source(%17 : memref<1x32xf32, #tpu.memory_space<any>>) target(%18 : memref<1x32xf32, #tpu.memory_space<vmem>>) target_semaphore(%arg8 : memref<!tpu.dma_semaphore, #tpu.memory_space<semaphore_mem>>)
    %c0_i32_11 = arith.constant 0 : i32
    %19 = tpu.memref_slice %arg5[%3, %c0_i32_11] : memref<64x32xf32, #tpu.memory_space<any>> -> memref<1x32xf32, #tpu.memory_space<any>>
    %c3_i32 = arith.constant 3 : i32
    %c0_i32_12 = arith.constant 0 : i32
    %20 = tpu.memref_slice %arg7[%c3_i32, %c0_i32_12] : memref<13x32xf32, #tpu.memory_space<vmem>> -> memref<1x32xf32, #tpu.memory_space<vmem>>
    tpu.enqueue_dma source(%19 : memref<1x32xf32, #tpu.memory_space<any>>) target(%20 : memref<1x32xf32, #tpu.memory_space<vmem>>) target_semaphore(%arg8 : memref<!tpu.dma_semaphore, #tpu.memory_space<semaphore_mem>>)
    %c0_i32_13 = arith.constant 0 : i32
    %21 = tpu.memref_slice %arg5[%4, %c0_i32_13] : memref<64x32xf32, #tpu.memory_space<any>> -> memref<1x32xf32, #tpu.memory_space<any>>
    %c4_i32 = arith.constant 4 : i32
    %c0_i32_14 = arith.constant 0 : i32
    %22 = tpu.memref_slice %arg7[%c4_i32, %c0_i32_14] : memref<13x32xf32, #tpu.memory_space<vmem>> -> memref<1x32xf32, #tpu.memory_space<vmem>>
    tpu.enqueue_dma source(%21 : memref<1x32xf32, #tpu.memory_space<any>>) target(%22 : memref<1x32xf32, #tpu.memory_space<vmem>>) target_semaphore(%arg8 : memref<!tpu.dma_semaphore, #tpu.memory_space<semaphore_mem>>)
    %c0_i32_15 = arith.constant 0 : i32
    %23 = tpu.memref_slice %arg5[%5, %c0_i32_15] : memref<64x32xf32, #tpu.memory_space<any>> -> memref<1x32xf32, #tpu.memory_space<any>>
    %c5_i32 = arith.constant 5 : i32
    %c0_i32_16 = arith.constant 0 : i32
    %24 = tpu.memref_slice %arg7[%c5_i32, %c0_i32_16] : memref<13x32xf32, #tpu.memory_space<vmem>> -> memref<1x32xf32, #tpu.memory_space<vmem>>
    tpu.enqueue_dma source(%23 : memref<1x32xf32, #tpu.memory_space<any>>) target(%24 : memref<1x32xf32, #tpu.memory_space<vmem>>) target_semaphore(%arg8 : memref<!tpu.dma_semaphore, #tpu.memory_space<semaphore_mem>>)
    %c0_i32_17 = arith.constant 0 : i32
    %25 = tpu.memref_slice %arg5[%6, %c0_i32_17] : memref<64x32xf32, #tpu.memory_space<any>> -> memref<1x32xf32, #tpu.memory_space<any>>
    %c6_i32 = arith.constant 6 : i32
    %c0_i32_18 = arith.constant 0 : i32
    %26 = tpu.memref_slice %arg7[%c6_i32, %c0_i32_18] : memref<13x32xf32, #tpu.memory_space<vmem>> -> memref<1x32xf32, #tpu.memory_space<vmem>>
    tpu.enqueue_dma source(%25 : memref<1x32xf32, #tpu.memory_space<any>>) target(%26 : memref<1x32xf32, #tpu.memory_space<vmem>>) target_semaphore(%arg8 : memref<!tpu.dma_semaphore, #tpu.memory_space<semaphore_mem>>)
    %c0_i32_19 = arith.constant 0 : i32
    %27 = tpu.memref_slice %arg5[%7, %c0_i32_19] : memref<64x32xf32, #tpu.memory_space<any>> -> memref<1x32xf32, #tpu.memory_space<any>>
    %c7_i32 = arith.constant 7 : i32
    %c0_i32_20 = arith.constant 0 : i32
    %28 = tpu.memref_slice %arg7[%c7_i32, %c0_i32_20] : memref<13x32xf32, #tpu.memory_space<vmem>> -> memref<1x32xf32, #tpu.memory_space<vmem>>
    tpu.enqueue_dma source(%27 : memref<1x32xf32, #tpu.memory_space<any>>) target(%28 : memref<1x32xf32, #tpu.memory_space<vmem>>) target_semaphore(%arg8 : memref<!tpu.dma_semaphore, #tpu.memory_space<semaphore_mem>>)
    %c0_i32_21 = arith.constant 0 : i32
    %29 = tpu.memref_slice %arg5[%8, %c0_i32_21] : memref<64x32xf32, #tpu.memory_space<any>> -> memref<1x32xf32, #tpu.memory_space<any>>
    %c8_i32 = arith.constant 8 : i32
    %c0_i32_22 = arith.constant 0 : i32
    %30 = tpu.memref_slice %arg7[%c8_i32, %c0_i32_22] : memref<13x32xf32, #tpu.memory_space<vmem>> -> memref<1x32xf32, #tpu.memory_space<vmem>>
    tpu.enqueue_dma source(%29 : memref<1x32xf32, #tpu.memory_space<any>>) target(%30 : memref<1x32xf32, #tpu.memory_space<vmem>>) target_semaphore(%arg8 : memref<!tpu.dma_semaphore, #tpu.memory_space<semaphore_mem>>)
    %c0_i32_23 = arith.constant 0 : i32
    %31 = tpu.memref_slice %arg5[%9, %c0_i32_23] : memref<64x32xf32, #tpu.memory_space<any>> -> memref<1x32xf32, #tpu.memory_space<any>>
    %c9_i32 = arith.constant 9 : i32
    %c0_i32_24 = arith.constant 0 : i32
    %32 = tpu.memref_slice %arg7[%c9_i32, %c0_i32_24] : memref<13x32xf32, #tpu.memory_space<vmem>> -> memref<1x32xf32, #tpu.memory_space<vmem>>
    tpu.enqueue_dma source(%31 : memref<1x32xf32, #tpu.memory_space<any>>) target(%32 : memref<1x32xf32, #tpu.memory_space<vmem>>) target_semaphore(%arg8 : memref<!tpu.dma_semaphore, #tpu.memory_space<semaphore_mem>>)
    %c0_i32_25 = arith.constant 0 : i32
    %33 = tpu.memref_slice %arg5[%10, %c0_i32_25] : memref<64x32xf32, #tpu.memory_space<any>> -> memref<1x32xf32, #tpu.memory_space<any>>
    %c10_i32 = arith.constant 10 : i32
    %c0_i32_26 = arith.constant 0 : i32
    %34 = tpu.memref_slice %arg7[%c10_i32, %c0_i32_26] : memref<13x32xf32, #tpu.memory_space<vmem>> -> memref<1x32xf32, #tpu.memory_space<vmem>>
    tpu.enqueue_dma source(%33 : memref<1x32xf32, #tpu.memory_space<any>>) target(%34 : memref<1x32xf32, #tpu.memory_space<vmem>>) target_semaphore(%arg8 : memref<!tpu.dma_semaphore, #tpu.memory_space<semaphore_mem>>)
    %c0_i32_27 = arith.constant 0 : i32
    %35 = tpu.memref_slice %arg5[%11, %c0_i32_27] : memref<64x32xf32, #tpu.memory_space<any>> -> memref<1x32xf32, #tpu.memory_space<any>>
    %c11_i32 = arith.constant 11 : i32
    %c0_i32_28 = arith.constant 0 : i32
    %36 = tpu.memref_slice %arg7[%c11_i32, %c0_i32_28] : memref<13x32xf32, #tpu.memory_space<vmem>> -> memref<1x32xf32, #tpu.memory_space<vmem>>
    tpu.enqueue_dma source(%35 : memref<1x32xf32, #tpu.memory_space<any>>) target(%36 : memref<1x32xf32, #tpu.memory_space<vmem>>) target_semaphore(%arg8 : memref<!tpu.dma_semaphore, #tpu.memory_space<semaphore_mem>>)
    %c0_i32_29 = arith.constant 0 : i32
    %37 = tpu.memref_slice %arg4[%12, %c0_i32_29] : memref<64x32xf32, #tpu.memory_space<any>> -> memref<1x32xf32, #tpu.memory_space<any>>
    %c12_i32 = arith.constant 12 : i32
    %c0_i32_30 = arith.constant 0 : i32
    %38 = tpu.memref_slice %arg7[%c12_i32, %c0_i32_30] : memref<13x32xf32, #tpu.memory_space<vmem>> -> memref<1x32xf32, #tpu.memory_space<vmem>>
    tpu.enqueue_dma source(%37 : memref<1x32xf32, #tpu.memory_space<any>>) target(%38 : memref<1x32xf32, #tpu.memory_space<vmem>>) target_semaphore(%arg8 : memref<!tpu.dma_semaphore, #tpu.memory_space<semaphore_mem>>)
    %c0_i32_31 = arith.constant 0 : i32
    %39 = tpu.memref_slice %arg5[%0, %c0_i32_31] : memref<64x32xf32, #tpu.memory_space<any>> -> memref<1x32xf32, #tpu.memory_space<any>>
    %c0_i32_32 = arith.constant 0 : i32
    %c0_i32_33 = arith.constant 0 : i32
    %40 = tpu.memref_slice %arg7[%c0_i32_32, %c0_i32_33] : memref<13x32xf32, #tpu.memory_space<vmem>> -> memref<1x32xf32, #tpu.memory_space<vmem>>
    tpu.wait_dma2 semaphore(%arg8 : memref<!tpu.dma_semaphore, #tpu.memory_space<semaphore_mem>>) src(%39 : memref<1x32xf32, #tpu.memory_space<any>>) dst(%40 : memref<1x32xf32, #tpu.memory_space<vmem>>)
    %c0_i32_34 = arith.constant 0 : i32
    %41 = tpu.memref_slice %arg5[%1, %c0_i32_34] : memref<64x32xf32, #tpu.memory_space<any>> -> memref<1x32xf32, #tpu.memory_space<any>>
    %c1_i32_35 = arith.constant 1 : i32
    %c0_i32_36 = arith.constant 0 : i32
    %42 = tpu.memref_slice %arg7[%c1_i32_35, %c0_i32_36] : memref<13x32xf32, #tpu.memory_space<vmem>> -> memref<1x32xf32, #tpu.memory_space<vmem>>
    tpu.wait_dma2 semaphore(%arg8 : memref<!tpu.dma_semaphore, #tpu.memory_space<semaphore_mem>>) src(%41 : memref<1x32xf32, #tpu.memory_space<any>>) dst(%42 : memref<1x32xf32, #tpu.memory_space<vmem>>)
    %c0_i32_37 = arith.constant 0 : i32
    %43 = tpu.memref_slice %arg5[%2, %c0_i32_37] : memref<64x32xf32, #tpu.memory_space<any>> -> memref<1x32xf32, #tpu.memory_space<any>>
    %c2_i32_38 = arith.constant 2 : i32
    %c0_i32_39 = arith.constant 0 : i32
    %44 = tpu.memref_slice %arg7[%c2_i32_38, %c0_i32_39] : memref<13x32xf32, #tpu.memory_space<vmem>> -> memref<1x32xf32, #tpu.memory_space<vmem>>
    tpu.wait_dma2 semaphore(%arg8 : memref<!tpu.dma_semaphore, #tpu.memory_space<semaphore_mem>>) src(%43 : memref<1x32xf32, #tpu.memory_space<any>>) dst(%44 : memref<1x32xf32, #tpu.memory_space<vmem>>)
    %c0_i32_40 = arith.constant 0 : i32
    %45 = tpu.memref_slice %arg5[%3, %c0_i32_40] : memref<64x32xf32, #tpu.memory_space<any>> -> memref<1x32xf32, #tpu.memory_space<any>>
    %c3_i32_41 = arith.constant 3 : i32
    %c0_i32_42 = arith.constant 0 : i32
    %46 = tpu.memref_slice %arg7[%c3_i32_41, %c0_i32_42] : memref<13x32xf32, #tpu.memory_space<vmem>> -> memref<1x32xf32, #tpu.memory_space<vmem>>
    tpu.wait_dma2 semaphore(%arg8 : memref<!tpu.dma_semaphore, #tpu.memory_space<semaphore_mem>>) src(%45 : memref<1x32xf32, #tpu.memory_space<any>>) dst(%46 : memref<1x32xf32, #tpu.memory_space<vmem>>)
    %c0_i32_43 = arith.constant 0 : i32
    %47 = tpu.memref_slice %arg5[%4, %c0_i32_43] : memref<64x32xf32, #tpu.memory_space<any>> -> memref<1x32xf32, #tpu.memory_space<any>>
    %c4_i32_44 = arith.constant 4 : i32
    %c0_i32_45 = arith.constant 0 : i32
    %48 = tpu.memref_slice %arg7[%c4_i32_44, %c0_i32_45] : memref<13x32xf32, #tpu.memory_space<vmem>> -> memref<1x32xf32, #tpu.memory_space<vmem>>
    tpu.wait_dma2 semaphore(%arg8 : memref<!tpu.dma_semaphore, #tpu.memory_space<semaphore_mem>>) src(%47 : memref<1x32xf32, #tpu.memory_space<any>>) dst(%48 : memref<1x32xf32, #tpu.memory_space<vmem>>)
    %c0_i32_46 = arith.constant 0 : i32
    %49 = tpu.memref_slice %arg5[%5, %c0_i32_46] : memref<64x32xf32, #tpu.memory_space<any>> -> memref<1x32xf32, #tpu.memory_space<any>>
    %c5_i32_47 = arith.constant 5 : i32
    %c0_i32_48 = arith.constant 0 : i32
    %50 = tpu.memref_slice %arg7[%c5_i32_47, %c0_i32_48] : memref<13x32xf32, #tpu.memory_space<vmem>> -> memref<1x32xf32, #tpu.memory_space<vmem>>
    tpu.wait_dma2 semaphore(%arg8 : memref<!tpu.dma_semaphore, #tpu.memory_space<semaphore_mem>>) src(%49 : memref<1x32xf32, #tpu.memory_space<any>>) dst(%50 : memref<1x32xf32, #tpu.memory_space<vmem>>)
    %c0_i32_49 = arith.constant 0 : i32
    %51 = tpu.memref_slice %arg5[%6, %c0_i32_49] : memref<64x32xf32, #tpu.memory_space<any>> -> memref<1x32xf32, #tpu.memory_space<any>>
    %c6_i32_50 = arith.constant 6 : i32
    %c0_i32_51 = arith.constant 0 : i32
    %52 = tpu.memref_slice %arg7[%c6_i32_50, %c0_i32_51] : memref<13x32xf32, #tpu.memory_space<vmem>> -> memref<1x32xf32, #tpu.memory_space<vmem>>
    tpu.wait_dma2 semaphore(%arg8 : memref<!tpu.dma_semaphore, #tpu.memory_space<semaphore_mem>>) src(%51 : memref<1x32xf32, #tpu.memory_space<any>>) dst(%52 : memref<1x32xf32, #tpu.memory_space<vmem>>)
    %c0_i32_52 = arith.constant 0 : i32
    %53 = tpu.memref_slice %arg5[%7, %c0_i32_52] : memref<64x32xf32, #tpu.memory_space<any>> -> memref<1x32xf32, #tpu.memory_space<any>>
    %c7_i32_53 = arith.constant 7 : i32
    %c0_i32_54 = arith.constant 0 : i32
    %54 = tpu.memref_slice %arg7[%c7_i32_53, %c0_i32_54] : memref<13x32xf32, #tpu.memory_space<vmem>> -> memref<1x32xf32, #tpu.memory_space<vmem>>
    tpu.wait_dma2 semaphore(%arg8 : memref<!tpu.dma_semaphore, #tpu.memory_space<semaphore_mem>>) src(%53 : memref<1x32xf32, #tpu.memory_space<any>>) dst(%54 : memref<1x32xf32, #tpu.memory_space<vmem>>)
    %c0_i32_55 = arith.constant 0 : i32
    %55 = tpu.memref_slice %arg5[%8, %c0_i32_55] : memref<64x32xf32, #tpu.memory_space<any>> -> memref<1x32xf32, #tpu.memory_space<any>>
    %c8_i32_56 = arith.constant 8 : i32
    %c0_i32_57 = arith.constant 0 : i32
    %56 = tpu.memref_slice %arg7[%c8_i32_56, %c0_i32_57] : memref<13x32xf32, #tpu.memory_space<vmem>> -> memref<1x32xf32, #tpu.memory_space<vmem>>
    tpu.wait_dma2 semaphore(%arg8 : memref<!tpu.dma_semaphore, #tpu.memory_space<semaphore_mem>>) src(%55 : memref<1x32xf32, #tpu.memory_space<any>>) dst(%56 : memref<1x32xf32, #tpu.memory_space<vmem>>)
    %c0_i32_58 = arith.constant 0 : i32
    %57 = tpu.memref_slice %arg5[%9, %c0_i32_58] : memref<64x32xf32, #tpu.memory_space<any>> -> memref<1x32xf32, #tpu.memory_space<any>>
    %c9_i32_59 = arith.constant 9 : i32
    %c0_i32_60 = arith.constant 0 : i32
    %58 = tpu.memref_slice %arg7[%c9_i32_59, %c0_i32_60] : memref<13x32xf32, #tpu.memory_space<vmem>> -> memref<1x32xf32, #tpu.memory_space<vmem>>
    tpu.wait_dma2 semaphore(%arg8 : memref<!tpu.dma_semaphore, #tpu.memory_space<semaphore_mem>>) src(%57 : memref<1x32xf32, #tpu.memory_space<any>>) dst(%58 : memref<1x32xf32, #tpu.memory_space<vmem>>)
    %c0_i32_61 = arith.constant 0 : i32
    %59 = tpu.memref_slice %arg5[%10, %c0_i32_61] : memref<64x32xf32, #tpu.memory_space<any>> -> memref<1x32xf32, #tpu.memory_space<any>>
    %c10_i32_62 = arith.constant 10 : i32
    %c0_i32_63 = arith.constant 0 : i32
    %60 = tpu.memref_slice %arg7[%c10_i32_62, %c0_i32_63] : memref<13x32xf32, #tpu.memory_space<vmem>> -> memref<1x32xf32, #tpu.memory_space<vmem>>
    tpu.wait_dma2 semaphore(%arg8 : memref<!tpu.dma_semaphore, #tpu.memory_space<semaphore_mem>>) src(%59 : memref<1x32xf32, #tpu.memory_space<any>>) dst(%60 : memref<1x32xf32, #tpu.memory_space<vmem>>)
    %c0_i32_64 = arith.constant 0 : i32
    %61 = tpu.memref_slice %arg5[%11, %c0_i32_64] : memref<64x32xf32, #tpu.memory_space<any>> -> memref<1x32xf32, #tpu.memory_space<any>>
    %c11_i32_65 = arith.constant 11 : i32
    %c0_i32_66 = arith.constant 0 : i32
    %62 = tpu.memref_slice %arg7[%c11_i32_65, %c0_i32_66] : memref<13x32xf32, #tpu.memory_space<vmem>> -> memref<1x32xf32, #tpu.memory_space<vmem>>
    tpu.wait_dma2 semaphore(%arg8 : memref<!tpu.dma_semaphore, #tpu.memory_space<semaphore_mem>>) src(%61 : memref<1x32xf32, #tpu.memory_space<any>>) dst(%62 : memref<1x32xf32, #tpu.memory_space<vmem>>)
    %c0_i32_67 = arith.constant 0 : i32
    %63 = tpu.memref_slice %arg4[%12, %c0_i32_67] : memref<64x32xf32, #tpu.memory_space<any>> -> memref<1x32xf32, #tpu.memory_space<any>>
    %c12_i32_68 = arith.constant 12 : i32
    %c0_i32_69 = arith.constant 0 : i32
    %64 = tpu.memref_slice %arg7[%c12_i32_68, %c0_i32_69] : memref<13x32xf32, #tpu.memory_space<vmem>> -> memref<1x32xf32, #tpu.memory_space<vmem>>
    tpu.wait_dma2 semaphore(%arg8 : memref<!tpu.dma_semaphore, #tpu.memory_space<semaphore_mem>>) src(%63 : memref<1x32xf32, #tpu.memory_space<any>>) dst(%64 : memref<1x32xf32, #tpu.memory_space<vmem>>)
    %c12 = arith.constant 12 : index
    %c0_70 = arith.constant 0 : index
    %65 = vector.load %arg7[%c12, %c0_70] : memref<13x32xf32, #tpu.memory_space<vmem>>, vector<1x32xf32>
    %c0_71 = arith.constant 0 : index
    %c0_72 = arith.constant 0 : index
    %66 = vector.load %arg7[%c0_71, %c0_72] : memref<13x32xf32, #tpu.memory_space<vmem>>, vector<12x32xf32>
    %67 = vector.broadcast %65 : vector<1x32xf32> to vector<12x32xf32>
    %68 = arith.mulf %66, %67 : vector<12x32xf32>
    %cst = arith.constant dense<0.000000e+00> : vector<12xf32>
    %69 = vector.multi_reduction <add>, %68, %cst [1] : vector<12x32xf32> to vector<12xf32>
    %70 = vector.shape_cast %69 : vector<12xf32> to vector<12x1xf32>
    %71 = vector.extract_strided_slice %70 {offsets = [0, 0], sizes = [4, 1], strides = [1, 1]} : vector<12x1xf32> to vector<4x1xf32>
    %72 = arith.negf %71 : vector<4x1xf32>
    %73 = math.exp %72 : vector<4x1xf32>
    %cst_73 = arith.constant 1.000000e+00 : f32
    %74 = vector.broadcast %cst_73 : f32 to vector<4x1xf32>
    %75 = arith.addf %74, %73 : vector<4x1xf32>
    %76 = arith.divf %74, %75 : vector<4x1xf32>
    %77 = vector.shape_cast %76 : vector<4x1xf32> to vector<1x4x1xf32>
    %cst_74 = arith.constant dense<0.000000e+00> : vector<1xf32>
    %78 = vector.multi_reduction <add>, %77, %cst_74 [1, 2] : vector<1x4x1xf32> to vector<1xf32>
    %79 = vector.shape_cast %78 : vector<1xf32> to vector<1x1x1xf32>
    %80 = vector.extract %79[0, 0, 0] : f32 from vector<1x1x1xf32>
    %81 = vector.broadcast %80 : f32 to vector<1x1xf32>
    %82 = vector.extract_strided_slice %70 {offsets = [4, 0], sizes = [8, 1], strides = [1, 1]} : vector<12x1xf32> to vector<8x1xf32>
    %cst_75 = arith.constant 0.000000e+00 : f32
    %83 = vector.broadcast %cst_75 : f32 to vector<8x1xf32>
    %84 = arith.subf %83, %82 : vector<8x1xf32>
    %85 = arith.negf %84 : vector<8x1xf32>
    %86 = math.exp %85 : vector<8x1xf32>
    %cst_76 = arith.constant 1.000000e+00 : f32
    %87 = vector.broadcast %cst_76 : f32 to vector<8x1xf32>
    %88 = arith.addf %87, %86 : vector<8x1xf32>
    %89 = arith.divf %87, %88 : vector<8x1xf32>
    %90 = vector.shape_cast %89 : vector<8x1xf32> to vector<1x8x1xf32>
    %cst_77 = arith.constant dense<0.000000e+00> : vector<1xf32>
    %91 = vector.multi_reduction <add>, %90, %cst_77 [1, 2] : vector<1x8x1xf32> to vector<1xf32>
    %92 = vector.shape_cast %91 : vector<1xf32> to vector<1x1x1xf32>
    %93 = vector.extract %92[0, 0, 0] : f32 from vector<1x1x1xf32>
    %94 = vector.broadcast %93 : f32 to vector<1x1xf32>
    %95 = arith.addf %81, %94 : vector<1x1xf32>
    %cst_78 = arith.constant 0.000000e+00 : f32
    %96 = vector.broadcast %cst_78 : f32 to vector<1x1xf32>
    %97 = arith.subf %96, %95 : vector<1x1xf32>
    %c0_79 = arith.constant 0 : index
    %c0_80 = arith.constant 0 : index
    %98 = vector.load %arg6[%c0_79, %c0_80] : memref<1x1xf32, #tpu.memory_space<vmem>>, vector<1x1xf32>
    tpu.vector_store %arg6[%c0_79, %c0_80], %97 {strides = array<i32>} : memref<1x1xf32, #tpu.memory_space<vmem>>, vector<1x1xf32>,
    return
  }
  func.func @transform_2(%arg0: i32, %arg1: memref<1xi32, #tpu.memory_space<smem>>, %arg2: memref<4xi32, #tpu.memory_space<smem>>, %arg3: memref<8xi32, #tpu.memory_space<smem>>) -> (i32, i32) {
    %c0_i32 = arith.constant 0 : i32
    %c0_i32_0 = arith.constant 0 : i32
    %c0_i32_1 = arith.constant 0 : i32
    return %c0_i32, %c0_i32_0 : i32, i32
  }
}

</mosaic_0001>

<bundles_post_ra>
// kernel: tpu_custom_call.1
= control target key start
LH: loop header
LB: loop body
LE: loop exit
PB: predicated region body
PF: predicated region fallthrough
CT: control target
= control target key end

     0   :  { %s1103_s0 = inlined_call_operand.<no memory space> [shape: s32[1], index: 0, kind: input, shape index: {}]   ;;  %s1104_s1 = inlined_call_operand.vmem [shape: s32[4], index: 1, kind: input, shape index: {}]   ;;  %s1105_s3 = inlined_call_operand.vmem [shape: f32[64,32], index: 3, kind: input, shape index: {}]   ;;  %s1106_s4 = inlined_call_operand.vmem [shape: f32[64,32], index: 4, kind: input, shape index: {}]   ;;  %s1107_s5 = inlined_call_operand.hbm [shape: f32[1,1], index: 5, kind: output, shape index: {}]   ;;  %s1108_s2 = inlined_call_operand.vmem [shape: s32[8], index: 2, kind: input, shape index: {}]  }
   0x1   :  { %s11_s20 = sshll.u32 %s1104_s1, 4  ;;  %s15_s23 = sshll.u32 %s1108_s2, 4  ;;  %s12_s20 = int_to_ptr.vmem [resolvable:$true] %s11_s20  ;;  %s16_s23 = int_to_ptr.vmem [resolvable:$true] %s15_s23 }
   0x2   :  { %s940_s24 = scalar_lea.vmem %s12_s20, 16  ;;  %p945_p1 = scmp.lt.s32.totalorder %s12_s20, %s12_s20 }
   0x3   :  { %p941_p0 = scmp.ne.s32.totalorder %s12_s20, %s940_s24  ;;  %p946_p2 = scmp.lt.s32.totalorder %s940_s24, %s940_s24 }
   0x5   :  { %p947_p3 = por %p946_p2, %p945_p1 }
   0x7   :  { %p948_p4 = pnand %p947_p3, %p941_p0 }
   0x9   :  { %951 = shalt.err (!%p948_p4)  }
   0xa   :  { %s992_s25 = smov [#allocation6]   ;;  %s952_s26 = scalar_lea.vmem %s16_s23, 16 }
   0xb   :  { %14 = dma.vmem_to_smem %s12_s20, 16, %s992_s25, [#allocation4] }
   0xc   :  { %p953_p5 = scmp.ne.s32.totalorder %s16_s23, %s952_s26  ;;  %p957_p6 = scmp.lt.s32.totalorder %s16_s23, %s16_s23 }
   0xd   :  { %p958_p7 = scmp.lt.s32.totalorder %s952_s26, %s952_s26 }
   0xf   :  { %p959_p8 = por %p958_p7, %p957_p6 }
  0x11   :  { %p960_p9 = pnand %p959_p8, %p953_p5 }
  0x13   :  { %963 = shalt.err (!%p960_p9)  }
  0x14   :  { %s993_s1 = smov [#allocation7]  }
  0x15   :  { %18 = dma.vmem_to_smem %s16_s23, 16, %s993_s1, [#allocation4] }
  0x16   :  { %986 = dma.done.wait [#allocation4], 32 }
  0x17   :  { %987 = vsyncadd [#allocation4], 4294967264 }
  0x18   :  { %20 = sfence }
  0x19   :  { %21 = vsyncpa [#allocation9], 0  ;;  %s22_s2 = sld [smem:[#allocation6]]  ;;  %s906_s27 = sld [smem:[#allocation6 + $0x1]] }
  0x1a   :  { %s907_s28 = sld [smem:[#allocation6 + $0x2]]  ;;  %s908_s29 = sld [smem:[#allocation6 + $0x3]] }
  0x1b   :  { %s26_s30 = sld [smem:[#allocation7]]  ;;  %s909_s6 = sld [smem:[#allocation7 + $0x1]] }
  0x1c   :  { %s1031_s7 = sld [smem:[#allocation7 + $0x2]]  ;;  %s1033_s8 = sld [smem:[#allocation7 + $0x3]] }
  0x1d   :  { %s1035_s9 = sld [smem:[#allocation7 + $0x4]]  ;;  %s1037_s10 = sld [smem:[#allocation7 + $0x5]] }
  0x1e   :  { %s1039_s11 = sld [smem:[#allocation7 + $0x6]]  ;;  %s1041_s12 = sld [smem:[#allocation7 + $0x7]] }
  0x1f   :  { %s35_s15 = scalar_lea.vmem %s1106_s4, %s22_s2 }
  0x20   :  { %v53_v0 = vld [vmem:[%s35_s15] sm:$0x1] }
  0x21   :  { %54 = vst [vmem:[#allocation2] sm:$0x1] %v53_v0 }
  0x22   :  { %79 = vsyncadd [#allocation3], 16  ;;  %s80_s18 = scalar_lea.vmem %s1106_s4, %s906_s27 }
  0x23   :  { %v99_v1 = vld [vmem:[%s80_s18] sm:$0x1] }
  0x24   :  { %100 = vst [vmem:[#allocation2 + $0x1] sm:$0x1] %v99_v1 }
  0x25   :  { %125 = vsyncadd [#allocation3], 16  ;;  %s126_s21 = scalar_lea.vmem %s1106_s4, %s907_s28 }
  0x26   :  { %v145_v2 = vld [vmem:[%s126_s21] sm:$0x1] }
  0x27   :  { %146 = vst [vmem:[#allocation2 + $0x2] sm:$0x1] %v145_v2 }
  0x28   :  { %171 = vsyncadd [#allocation3], 16  ;;  %s172_s24 = scalar_lea.vmem %s1106_s4, %s908_s29 }
  0x29   :  { %v191_v3 = vld [vmem:[%s172_s24] sm:$0x1] }
  0x2a   :  { %192 = vst [vmem:[#allocation2 + $0x3] sm:$0x1] %v191_v3 }
  0x2b   :  { %217 = vsyncadd [#allocation3], 16  ;;  %s218_s1 = scalar_lea.vmem %s1106_s4, %s26_s30 }
  0x2c   :  { %v237_v4 = vld [vmem:[%s218_s1] sm:$0x1] }
  0x2d   :  { %238 = vst [vmem:[#allocation2 + $0x4] sm:$0x1] %v237_v4 }
  0x2e   :  { %263 = vsyncadd [#allocation3], 16  ;;  %s264_s28 = scalar_lea.vmem %s1106_s4, %s909_s6 }
  0x2f   :  { %v283_v5 = vld [vmem:[%s264_s28] sm:$0x1] }
  0x30   :  { %284 = vst [vmem:[#allocation2 + $0x5] sm:$0x1] %v283_v5 }
  0x31   :  { %309 = vsyncadd [#allocation3], 16  ;;  %s310_s14 = scalar_lea.vmem %s1106_s4, %s1031_s7 }
  0x32   :  { %v329_v6 = vld [vmem:[%s310_s14] sm:$0x1] }
  0x33   :  { %330 = vst [vmem:[#allocation2 + $0x6] sm:$0x1] %v329_v6 }
  0x34   :  { %355 = vsyncadd [#allocation3], 16  ;;  %s356_s16 = scalar_lea.vmem %s1106_s4, %s1033_s8 }
  0x35   :  { %v375_v7 = vld [vmem:[%s356_s16] sm:$0x1] }
  0x36   :  { %376 = vst [vmem:[#allocation2 + $0x7] sm:$0x1] %v375_v7 }
  0x37   :  { %401 = vsyncadd [#allocation3], 16  ;;  %s402_s18 = scalar_lea.vmem %s1106_s4, %s1035_s9 }
  0x38   :  { %v421_v8 = vld [vmem:[%s402_s18] sm:$0x1] }
  0x39   :  { %422 = vst [vmem:[#allocation2 + $0x8] sm:$0x1] %v421_v8 }
  0x3a   :  { %447 = vsyncadd [#allocation3], 16  ;;  %s448_s20 = scalar_lea.vmem %s1106_s4, %s1037_s10 }
  0x3b   :  { %v467_v9 = vld [vmem:[%s448_s20] sm:$0x1] }
  0x3c   :  { %468 = vst [vmem:[#allocation2 + $0x9] sm:$0x1] %v467_v9 }
  0x3d   :  { %493 = vsyncadd [#allocation3], 16  ;;  %s494_s22 = scalar_lea.vmem %s1106_s4, %s1039_s11 }
  0x3e   :  { %v513_v10 = vld [vmem:[%s494_s22] sm:$0x1] }
  0x3f   :  { %514 = vst [vmem:[#allocation2 + $0xa] sm:$0x1] %v513_v10 }
  0x40   :  { %539 = vsyncadd [#allocation3], 16  ;;  %s540_s24 = scalar_lea.vmem %s1106_s4, %s1041_s12 }
  0x41   :  { %v559_v11 = vld [vmem:[%s540_s24] sm:$0x1] }
  0x42   :  { %560 = vst [vmem:[#allocation2 + $0xb] sm:$0x1] %v559_v11 }
  0x43   :  { %585 = vsyncadd [#allocation3], 16  ;;  %s586_s2 = scalar_lea.vmem %s1105_s3, %s1103_s0 }
  0x44   :  { %v605_v12 = vld [vmem:[%s586_s2] sm:$0x1] }
  0x45   :  { %606 = vst [vmem:[#allocation2 + $0xc] sm:$0x1] %v605_v12 }
  0x46   :  { %631 = vsyncadd [#allocation3], 16 }
  0x47   :  { %988 = dma.done.wait [#allocation3], 208 }
  0x48   :  { %989 = vsyncadd [#allocation3], 4294967088  ;;  %v660_v14 = vld [vmem:[#allocation2] sm:$0xff]  ;;  %vm668_vm0 = vcmask 261120   ;;  %vm672_vm1 = vcmask 257024   ;;  %vm682_vm2 = vcmask 3072  }
  0x49   :  { %v661_v15 = vld [vmem:[#allocation2 + $0x8] sm:$0xf]  ;;  %vm710_vm3 = vcmask 1043456   ;;  %vm715_vm4 = vcmask 7168   ;;  %s994_s4 = smov [#allocation8]   ;;  %vm729_vm5 = vcmask 0  }
  0x4a   :  { %s737_s11 = sshll.u32 %s994_s4, 4  ;;  %s738_s11 = int_to_ptr.vmem [resolvable:$true] %s737_s11 }
  0x4b   :  { %s964_s12 = scalar_lea.vmem %s738_s11, 16  ;;  %s968_s27 = scalar_lea.vmem %s738_s11, 32 }
  0x4c   :  { %v916_v13 = vld [vmem:[#allocation2 + $0xc] ss:$0 sm:$0xff]  ;;  %p965_p10 = scmp.ne.s32.totalorder %s738_s11, %s964_s12  ;;  %p969_p11 = scmp.lt.s32.totalorder %s738_s11, %s738_s11 }
  0x4d   :  { %v666_v16 = vmul.f32 %v916_v13, %v660_v14  ;;  %v667_v17 = vmul.f32 %v916_v13, %v661_v15  ;;  %p970_p12 = scmp.lt.s32.totalorder %s968_s27, %s964_s12 }
  0x4f   :  { %v669_v18 = vsel %vm668_vm0, %v666_v16, 0.0  ;;  %v673_v19 = vsel %vm672_vm1, %v667_v17, 0.0  ;;  %p971_p13 = por %p970_p12, %p969_p11 }
  0x50   :  { %670 = vadd.xlane.f32.xlu0 %v669_v18 }
  0x51   :  { %p972_p0 = pnand %p971_p13, %p965_p10 }
  0x54   :  { %674 = vadd.xlane.f32.xlu0 %v673_v19 }
  0xdd   :  { %v671_v20 = vpop.xlane.xlu0 %670 }
  0xde   :  { %v917_v21 = vmul.f32 -1.442695, %v671_v20  ;;  %v694_v22 = vsub.f32 0.0, %v671_v20 }
  0xe0   :  { %928 = vpow2.f32 %v917_v21  ;;  %v918_v23 = vmul.f32 -1.442695, %v694_v22 }
  0xe1   :  { %v675_v24 = vpop.xlane.xlu0 %674 }
  0xe2   :  { %930 = vpow2.f32 %v918_v23  ;;  %v695_v25 = vsub.f32 0.0, %v675_v24 }
  0xe4   :  { %v919_v26 = vmul.f32 -1.442695, %v695_v25 }
  0xe6   :  { %932 = vpow2.f32 %v919_v26 }
  0xea   :  { %v929_v27 = vpop.eup %928 }
  0xeb   :  { %v679_v28 = vadd.f32 1.0, %v929_v27 }
  0xec   :  { %v931_v29 = vpop.eup %930 }
  0xed   :  { %934 = vrcp.f32 %v679_v28  ;;  %v702_v30 = vadd.f32 1.0, %v931_v29 }
  0xef   :  { %936 = vrcp.f32 %v702_v30 }
  0xf0   :  { %v933_v31 = vpop.eup %932 }
  0xf1   :  { %v703_v32 = vadd.f32 1.0, %v933_v31 }
  0xf3   :  { %938 = vrcp.f32 %v703_v32 }
  0xf7   :  { %v935_v33 = vpop.eup %934 }
  0xf8   :  { %v683_v34 = vsel %vm682_vm2, %v935_v33, 0.0 }
  0xf9   :  { %684 = vadd.xlane.f32.xlu1 %v683_v34  ;;  %v937_v35 = vpop.eup %936 }
  0xfa   :  { %v711_v37 = vrot.slane %v937_v35, 4 }
  0xfd   :  { %v939_v36 = vpop.eup %938 }
  0xfe   :  { %v712_v38 = vrot.slane %v939_v36, 4 }
 0x100   :  { %v713_v39 = vsel %vm710_vm3, %v711_v37, %v712_v38 }
 0x101   :  { %v716_v40 = vsel %vm715_vm4, %v713_v39, 0.0 }
 0x102   :  { %717 = vadd.xlane.f32.xlu1 %v716_v40 }
 0x186   :  { %v685_v41 = vpop.xlane.xlu1 %684 }
 0x187   :  { %v686_v42 = vrot.slane %v685_v41, 4 }
 0x189   :  { %v687_v43 = vadd.f32 %v686_v42, %v685_v41 }
 0x18b   :  { %v688_v44 = vrot.slane %v687_v43, 2 }
 0x18d   :  { %v689_v45 = vadd.f32 %v688_v44, %v687_v43 }
 0x18f   :  { %v718_v46 = vpop.xlane.xlu1 %717  ;;  %v690_v47 = vrot.slane %v689_v45, 1 }
 0x190   :  { %v719_v48 = vrot.slane %v718_v46, 4 }
 0x191   :  { %v691_v49 = vadd.f32 %v690_v47, %v689_v45 }
 0x192   :  { %v720_v50 = vadd.f32 %v719_v48, %v718_v46 }
 0x193   :  { %921 = vpush %v691_v49 }
 0x194   :  { %v721_v51 = vrot.slane %v720_v50, 2 }
 0x196   :  { %v722_v52 = vadd.f32 %v721_v51, %v720_v50 }
 0x198   :  { %v723_v53 = vrot.slane %v722_v52, 1 }
 0x19a   :  { %v724_v54 = vadd.f32 %v723_v53, %v722_v52 }
 0x19c   :  { %923 = vpush %v724_v54 }
 0x1c4   :  { %s922_s0 = spop %921 }
 0x1c5   :  { %v693_v55 = vstv %s922_s0 }
 0x1cd   :  { %s924_s3 = spop %923 }
 0x1ce   :  { %v726_v56 = vstv %s924_s3 }
 0x1cf   :  { %v727_v57 = vadd.f32 %v726_v56, %v693_v55 }
 0x1d1   :  { %v728_v58 = vsub.f32 0.0, %v727_v57 }
 0x1d3   :  { %730 = vst.msk [vmem:[#allocation8] sm:$0x1] %vm729_vm5, %v728_v58 }
 0x1d4   :  { %975 = shalt.err (!%p972_p0)
}
 0x1d5   :  { %s976_s29 = scalar_lea.hbm %s1107_s5, 16 }
 0x1d6   :  { %p977_p1 = scmp.ne.s32.totalorder %s1107_s5, %s976_s29  ;;  %p980_p2 = scmp.lt.u32.totalorder %s976_s29, %s1107_s5 }
 0x1d8   :  { %p982_p3 = pnand %p980_p2, %p977_p1 }
 0x1da   :  { %985 = shalt.err (!%p982_p3)
}
 0x1db   :  { %740 = dma.vmem_to_hbm [thread:$0]  %s738_s11, 16, %s1107_s5, [#allocation9]  }
 0x1dc   :  { %990 = dma.done.wait [#allocation9], 16  }
 0x1dd   :  { %991 = vsyncadd [#allocation9], 4294967280 }
 0x1de   :  { %744 = vsyncpa [#allocation9], 1 }
 0x1df   :  { %745 = vsyncmov [#allocation3] }
 0x1e2   :  { %s746_s18 = vpop.sfrf %745 }
 0x1e3   :  { %p920_p4 = scmp.ne.s32.totalorder %s746_s18, 0 }
 0x1e5   :  { %750 = shalt.err (%p920_p4)  }

</bundles_post_ra>
